<compile_context>
chip_gen: v7x
topology: tpu7x:2x2x1
jax: 0.10.0
libtpu: 0.0.40
codegen_flags: <defaults>
</compile_context>

<pallas_src>
import functools

import jax
import jax.numpy as jnp
from jax import lax
from jax.experimental import pallas as pl
from jax.experimental.pallas import tpu as pltpu


def _contrastive_partial_kernel(margin_ref, img_ref, txt_ref, out_ref, *,
                                rows_per_block, group, feat, batch):
    """Per-tile partial sums.

    img_ref/txt_ref: (rows_per_block, group*feat) lane-dense packed features.
      Packed row r, group c holds original row (tile*rows_per_block + r)*group + c.
    out_ref: (8, 128) block. Row 0 = sum_j d_j^2, row 1 = sum_j relu(margin - d_j)^2
      over the (valid) original rows covered by this tile; rest zeros.
    """
    i = pl.program_id(0)
    margin = margin_ref[0]                                   # SMEM scalar

    img = img_ref[...].astype(jnp.float32)
    txt = txt_ref[...].astype(jnp.float32)
    diff = (img - txt) + jnp.float32(1e-6)                   # F.pairwise_distance eps on the difference
    diff2 = diff * diff                                      # full-lane VPU work

    # Original-row index base for each packed row of this tile.
    r_iota = lax.broadcasted_iota(jnp.int32, (rows_per_block, 1), 0)
    base = (i * rows_per_block + r_iota) * group             # (T, 1)

    sum_d2 = jnp.float32(0.0)
    sum_h2 = jnp.float32(0.0)
    for c in range(group):                                   # static unroll, group <= 16
        d2_c = jnp.sum(diff2[:, c * feat:(c + 1) * feat], axis=-1, keepdims=True)   # (T, 1)
        d_c = jnp.sqrt(d2_c)
        h_c = jnp.maximum(margin - d_c, 0.0)
        valid = (base + c) < batch                           # mask padded rows
        sum_d2 = sum_d2 + jnp.sum(jnp.where(valid, d2_c, 0.0))
        sum_h2 = sum_h2 + jnp.sum(jnp.where(valid, h_c * h_c, 0.0))

    # Full (8,128) unmasked store: row 0 carries sum_d2, row 1 carries sum_h2.
    sel = lax.broadcasted_iota(jnp.int32, (8, 128), 0)
    out_ref[...] = (jnp.where(sel == 0, sum_d2, 0.0)
                    + jnp.where(sel == 1, sum_h2, 0.0))


def contrastive_loss(image_features: jax.Array,
                     text_features: jax.Array,
                     margin: float = 1.0,
                     *,
                     block_rows: int | None = None) -> jax.Array:
    """Contrastive loss between (B, D) image and text features -> scalar f32."""
    b, feat = image_features.shape
    assert text_features.shape == (b, feat)

    # Lane-dense packing factor: fold `group` consecutive rows into one 128-lane row.
    if feat < 128 and (128 % feat == 0) and feat >= 8:
        group = 128 // feat
    else:
        group = 1
    lanes = group * feat

    # Tile rows so 2 inputs x 2 pipeline buffers fit comfortably in scoped VMEM on all
    # generations (incl. v7x's tighter budget); >=512 rows when the batch is large enough.
    itemsize = jnp.dtype(image_features.dtype).itemsize
    budget_bytes = 8 * 1024 * 1024
    tm = budget_bytes // (2 * 2 * lanes * itemsize)
    tm = max(8, min(1024, (tm // 8) * 8))
    if block_rows is not None:
        tm = max(8, (block_rows // 8) * 8)
    packed_needed = max(8, ((-(-b // group)) + 7) // 8 * 8)   # ceil(B/group), rounded up to 8
    tm = min(tm, packed_needed)

    rows_per_tile = tm * group                                # original rows per grid step
    grid = max(1, -(-b // rows_per_tile))
    b_pad = grid * rows_per_tile
    packed_rows = b_pad // group                              # == grid * tm

    def _prep(x):
        if b_pad != b:
            x = jnp.pad(x, ((0, b_pad - b), (0, 0)))          # padded rows are masked in-kernel
        return x.reshape(packed_rows, lanes)                  # layout-preserving (row-major) repack

    img_p = _prep(image_features)
    txt_p = _prep(text_features)
    margin_arr = jnp.asarray([margin], dtype=jnp.float32)

    kernel = functools.partial(_contrastive_partial_kernel,
                               rows_per_block=tm, group=group, feat=feat, batch=b)

    partials = pl.pallas_call(
        kernel,
        out_shape=jax.ShapeDtypeStruct((grid * 8, 128), jnp.float32),
        grid=(grid,),
        in_specs=[
            pl.BlockSpec(memory_space=pltpu.MemorySpace.SMEM),       # margin scalar
            pl.BlockSpec((tm, lanes), lambda i: (i, 0)),
            pl.BlockSpec((tm, lanes), lambda i: (i, 0)),
        ],
        out_specs=pl.BlockSpec((8, 128), lambda i: (i, 0)),
        compiler_params=pltpu.CompilerParams(
            dimension_semantics=("parallel",)),
    )(margin_arr, img_p, txt_p)

    p3 = partials.reshape(grid, 8, 128)
    sum_d2 = jnp.sum(p3[:, 0, 0])
    sum_h2 = jnp.sum(p3[:, 1, 0])
    bf = jnp.float32(b)
    return (sum_d2 + (bf - 1.0) * sum_h2) / (2.0 * bf * bf)


def _reference_loss(img, txt, margin=1.0):
    """Pure-JAX reference mirroring the PyTorch module exactly (for verification)."""
    b = img.shape[0]
    d = jnp.sqrt(jnp.sum((img.astype(jnp.float32) - txt.astype(jnp.float32) + 1e-6) ** 2, axis=-1))
    eye = jnp.eye(b, dtype=jnp.float32)
    label = 1.0 - eye
    d_b = d[None, :]                                          # broadcasts along the last dim
    loss = 0.5 * ((1.0 - label) * d_b ** 2
                  + label * jnp.maximum(margin - d_b, 0.0) ** 2)
    return jnp.mean(loss)


if __name__ == "__main__":
    key = jax.random.PRNGKey(0)
    k1, k2, k3, k4 = jax.random.split(key, 4)

    # Case 1: lane-packed path (D < 128), single tile.
    b1, d1, m1 = 8, 32, 1.0
    img1 = jax.random.normal(k1, (b1, d1), dtype=jnp.float32)
    txt1 = jax.random.normal(k2, (b1, d1), dtype=jnp.float32)
    out1 = jax.block_until_ready(contrastive_loss(img1, txt1, m1))
    ref1 = _reference_loss(img1, txt1, m1)
    assert jnp.allclose(out1, ref1, rtol=1e-5, atol=1e-5), (out1, ref1)

    # Case 2: multi-tile grid + ragged batch (mask) + large margin so the hinge term is active.
    b2, d2, m2 = 40, 32, 10.0
    img2 = jax.random.normal(k3, (b2, d2), dtype=jnp.float32)
    txt2 = jax.random.normal(k4, (b2, d2), dtype=jnp.float32)
    out2 = jax.block_until_ready(contrastive_loss(img2, txt2, m2, block_rows=8))
    ref2 = _reference_loss(img2, txt2, m2)
    assert jnp.allclose(out2, ref2, rtol=1e-5, atol=1e-5), (out2, ref2)

    # Case 3: wide-feature path (D >= 128, no packing), multi-tile.
    b3, d3, m3 = 16, 256, 1.0
    img3 = jax.random.normal(k1, (b3, d3), dtype=jnp.float32)
    txt3 = jax.random.normal(k2, (b3, d3), dtype=jnp.float32)
    out3 = jax.block_until_ready(contrastive_loss(img3, txt3, m3, block_rows=8))
    ref3 = _reference_loss(img3, txt3, m3)
    assert jnp.allclose(out3, ref3, rtol=1e-5, atol=1e-5), (out3, ref3)

    print("KERNEL_OK")
</pallas_src>

<mosaic_0001>
module attributes {stable_mosaic.version = 11 : i64} {
  func.func @_contrastive_partial_kernel(%arg0: i32, %arg1: memref<1xf32, #tpu.memory_space<smem>>, %arg2: memref<8x128xf32, #tpu.memory_space<vmem>>, %arg3: memref<8x128xf32, #tpu.memory_space<vmem>>, %arg4: memref<8x128xf32, #tpu.memory_space<vmem>>) attributes {dimension_semantics = [#tpu.dimension_semantics<parallel>], iteration_bounds = array<i64: 1>, scalar_prefetch = 0 : i64, scratch_operands = 0 : i64, tpu.core_type = #tpu.core_type<tc>, window_params = [{transform_indices = @transform_0, window_bounds = array<i64: 1>}, {transform_indices = @transform_1, window_bounds = array<i64: 8, 128>}, {transform_indices = @transform_2, window_bounds = array<i64: 8, 128>}, {transform_indices = @transform_3, window_bounds = array<i64: 8, 128>}]} {
    %c0 = arith.constant 0 : index
    %0 = memref.load %arg1[%c0] : memref<1xf32, #tpu.memory_space<smem>>
    %c0_0 = arith.constant 0 : index
    %c0_1 = arith.constant 0 : index
    %1 = vector.load %arg2[%c0_0, %c0_1] : memref<8x128xf32, #tpu.memory_space<vmem>>, vector<8x128xf32>
    %c0_2 = arith.constant 0 : index
    %c0_3 = arith.constant 0 : index
    %2 = vector.load %arg3[%c0_2, %c0_3] : memref<8x128xf32, #tpu.memory_space<vmem>>, vector<8x128xf32>
    %3 = arith.subf %1, %2 : vector<8x128xf32>
    %cst = arith.constant 9.99999997E-7 : f32
    %4 = vector.broadcast %cst : f32 to vector<8x128xf32>
    %5 = arith.addf %3, %4 : vector<8x128xf32>
    %6 = arith.mulf %5, %5 : vector<8x128xf32>
    %7 = tpu.iota {dimensions = array<i32: 0>} : vector<8x1xi32>
    %c8_i32 = arith.constant 8 : i32
    %8 = arith.muli %arg0, %c8_i32 : i32
    %9 = vector.broadcast %8 : i32 to vector<8x1xi32>
    %10 = arith.addi %9, %7 : vector<8x1xi32>
    %c4_i32 = arith.constant 4 : i32
    %11 = vector.broadcast %c4_i32 : i32 to vector<8x1xi32>
    %12 = arith.muli %10, %11 : vector<8x1xi32>
    %13 = vector.extract_strided_slice %6 {offsets = [0, 0], sizes = [8, 32], strides = [1, 1]} : vector<8x128xf32> to vector<8x32xf32>
    %cst_4 = arith.constant dense<0.000000e+00> : vector<8xf32>
    %14 = vector.multi_reduction <add>, %13, %cst_4 [1] : vector<8x32xf32> to vector<8xf32>
    %15 = vector.shape_cast %14 : vector<8xf32> to vector<8x1xf32>
    %16 = math.sqrt %15 : vector<8x1xf32>
    %17 = vector.broadcast %0 : f32 to vector<8x1xf32>
    %18 = arith.subf %17, %16 : vector<8x1xf32>
    %cst_5 = arith.constant 0.000000e+00 : f32
    %19 = vector.broadcast %cst_5 : f32 to vector<8x1xf32>
    %20 = arith.maximumf %18, %19 : vector<8x1xf32>
    %c0_i32 = arith.constant 0 : i32
    %21 = vector.broadcast %c0_i32 : i32 to vector<8x1xi32>
    %22 = arith.addi %12, %21 : vector<8x1xi32>
    %c8_i32_6 = arith.constant 8 : i32
    %23 = vector.broadcast %c8_i32_6 : i32 to vector<8x1xi32>
    %24 = arith.cmpi slt, %22, %23 : vector<8x1xi32>
    %cst_7 = arith.constant 0.000000e+00 : f32
    %25 = vector.broadcast %cst_7 : f32 to vector<8x1xf32>
    %26 = arith.select %24, %15, %25 : vector<8x1xi1>, vector<8x1xf32>
    %27 = vector.shape_cast %26 : vector<8x1xf32> to vector<1x8x1xf32>
    %cst_8 = arith.constant dense<0.000000e+00> : vector<1xf32>
    %28 = vector.multi_reduction <add>, %27, %cst_8 [1, 2] : vector<1x8x1xf32> to vector<1xf32>
    %29 = vector.shape_cast %28 : vector<1xf32> to vector<1x1x1xf32>
    %30 = vector.extract %29[0, 0, 0] : f32 from vector<1x1x1xf32>
    %cst_9 = arith.constant 0.000000e+00 : f32
    %31 = arith.addf %cst_9, %30 : f32
    %32 = arith.mulf %20, %20 : vector<8x1xf32>
    %cst_10 = arith.constant 0.000000e+00 : f32
    %33 = vector.broadcast %cst_10 : f32 to vector<8x1xf32>
    %34 = arith.select %24, %32, %33 : vector<8x1xi1>, vector<8x1xf32>
    %35 = vector.shape_cast %34 : vector<8x1xf32> to vector<1x8x1xf32>
    %cst_11 = arith.constant dense<0.000000e+00> : vector<1xf32>
    %36 = vector.multi_reduction <add>, %35, %cst_11 [1, 2] : vector<1x8x1xf32> to vector<1xf32>
    %37 = vector.shape_cast %36 : vector<1xf32> to vector<1x1x1xf32>
    %38 = vector.extract %37[0, 0, 0] : f32 from vector<1x1x1xf32>
    %cst_12 = arith.constant 0.000000e+00 : f32
    %39 = arith.addf %cst_12, %38 : f32
    %40 = vector.extract_strided_slice %6 {offsets = [0, 32], sizes = [8, 32], strides = [1, 1]} : vector<8x128xf32> to vector<8x32xf32>
    %cst_13 = arith.constant dense<0.000000e+00> : vector<8xf32>
    %41 = vector.multi_reduction <add>, %40, %cst_13 [1] : vector<8x32xf32> to vector<8xf32>
    %42 = vector.shape_cast %41 : vector<8xf32> to vector<8x1xf32>
    %43 = math.sqrt %42 : vector<8x1xf32>
    %44 = vector.broadcast %0 : f32 to vector<8x1xf32>
    %45 = arith.subf %44, %43 : vector<8x1xf32>
    %cst_14 = arith.constant 0.000000e+00 : f32
    %46 = vector.broadcast %cst_14 : f32 to vector<8x1xf32>
    %47 = arith.maximumf %45, %46 : vector<8x1xf32>
    %c1_i32 = arith.constant 1 : i32
    %48 = vector.broadcast %c1_i32 : i32 to vector<8x1xi32>
    %49 = arith.addi %12, %48 : vector<8x1xi32>
    %c8_i32_15 = arith.constant 8 : i32
    %50 = vector.broadcast %c8_i32_15 : i32 to vector<8x1xi32>
    %51 = arith.cmpi slt, %49, %50 : vector<8x1xi32>
    %cst_16 = arith.constant 0.000000e+00 : f32
    %52 = vector.broadcast %cst_16 : f32 to vector<8x1xf32>
    %53 = arith.select %51, %42, %52 : vector<8x1xi1>, vector<8x1xf32>
    %54 = vector.shape_cast %53 : vector<8x1xf32> to vector<1x8x1xf32>
    %cst_17 = arith.constant dense<0.000000e+00> : vector<1xf32>
    %55 = vector.multi_reduction <add>, %54, %cst_17 [1, 2] : vector<1x8x1xf32> to vector<1xf32>
    %56 = vector.shape_cast %55 : vector<1xf32> to vector<1x1x1xf32>
    %57 = vector.extract %56[0, 0, 0] : f32 from vector<1x1x1xf32>
    %58 = arith.addf %31, %57 : f32
    %59 = arith.mulf %47, %47 : vector<8x1xf32>
    %cst_18 = arith.constant 0.000000e+00 : f32
    %60 = vector.broadcast %cst_18 : f32 to vector<8x1xf32>
    %61 = arith.select %51, %59, %60 : vector<8x1xi1>, vector<8x1xf32>
    %62 = vector.shape_cast %61 : vector<8x1xf32> to vector<1x8x1xf32>
    %cst_19 = arith.constant dense<0.000000e+00> : vector<1xf32>
    %63 = vector.multi_reduction <add>, %62, %cst_19 [1, 2] : vector<1x8x1xf32> to vector<1xf32>
    %64 = vector.shape_cast %63 : vector<1xf32> to vector<1x1x1xf32>
    %65 = vector.extract %64[0, 0, 0] : f32 from vector<1x1x1xf32>
    %66 = arith.addf %39, %65 : f32
    %67 = vector.extract_strided_slice %6 {offsets = [0, 64], sizes = [8, 32], strides = [1, 1]} : vector<8x128xf32> to vector<8x32xf32>
    %cst_20 = arith.constant dense<0.000000e+00> : vector<8xf32>
    %68 = vector.multi_reduction <add>, %67, %cst_20 [1] : vector<8x32xf32> to vector<8xf32>
    %69 = vector.shape_cast %68 : vector<8xf32> to vector<8x1xf32>
    %70 = math.sqrt %69 : vector<8x1xf32>
    %71 = vector.broadcast %0 : f32 to vector<8x1xf32>
    %72 = arith.subf %71, %70 : vector<8x1xf32>
    %cst_21 = arith.constant 0.000000e+00 : f32
    %73 = vector.broadcast %cst_21 : f32 to vector<8x1xf32>
    %74 = arith.maximumf %72, %73 : vector<8x1xf32>
    %c2_i32 = arith.constant 2 : i32
    %75 = vector.broadcast %c2_i32 : i32 to vector<8x1xi32>
    %76 = arith.addi %12, %75 : vector<8x1xi32>
    %c8_i32_22 = arith.constant 8 : i32
    %77 = vector.broadcast %c8_i32_22 : i32 to vector<8x1xi32>
    %78 = arith.cmpi slt, %76, %77 : vector<8x1xi32>
    %cst_23 = arith.constant 0.000000e+00 : f32
    %79 = vector.broadcast %cst_23 : f32 to vector<8x1xf32>
    %80 = arith.select %78, %69, %79 : vector<8x1xi1>, vector<8x1xf32>
    %81 = vector.shape_cast %80 : vector<8x1xf32> to vector<1x8x1xf32>
    %cst_24 = arith.constant dense<0.000000e+00> : vector<1xf32>
    %82 = vector.multi_reduction <add>, %81, %cst_24 [1, 2] : vector<1x8x1xf32> to vector<1xf32>
    %83 = vector.shape_cast %82 : vector<1xf32> to vector<1x1x1xf32>
    %84 = vector.extract %83[0, 0, 0] : f32 from vector<1x1x1xf32>
    %85 = arith.addf %58, %84 : f32
    %86 = arith.mulf %74, %74 : vector<8x1xf32>
    %cst_25 = arith.constant 0.000000e+00 : f32
    %87 = vector.broadcast %cst_25 : f32 to vector<8x1xf32>
    %88 = arith.select %78, %86, %87 : vector<8x1xi1>, vector<8x1xf32>
    %89 = vector.shape_cast %88 : vector<8x1xf32> to vector<1x8x1xf32>
    %cst_26 = arith.constant dense<0.000000e+00> : vector<1xf32>
    %90 = vector.multi_reduction <add>, %89, %cst_26 [1, 2] : vector<1x8x1xf32> to vector<1xf32>
    %91 = vector.shape_cast %90 : vector<1xf32> to vector<1x1x1xf32>
    %92 = vector.extract %91[0, 0, 0] : f32 from vector<1x1x1xf32>
    %93 = arith.addf %66, %92 : f32
    %94 = vector.extract_strided_slice %6 {offsets = [0, 96], sizes = [8, 32], strides = [1, 1]} : vector<8x128xf32> to vector<8x32xf32>
    %cst_27 = arith.constant dense<0.000000e+00> : vector<8xf32>
    %95 = vector.multi_reduction <add>, %94, %cst_27 [1] : vector<8x32xf32> to vector<8xf32>
    %96 = vector.shape_cast %95 : vector<8xf32> to vector<8x1xf32>
    %97 = math.sqrt %96 : vector<8x1xf32>
    %98 = vector.broadcast %0 : f32 to vector<8x1xf32>
    %99 = arith.subf %98, %97 : vector<8x1xf32>
    %cst_28 = arith.constant 0.000000e+00 : f32
    %100 = vector.broadcast %cst_28 : f32 to vector<8x1xf32>
    %101 = arith.maximumf %99, %100 : vector<8x1xf32>
    %c3_i32 = arith.constant 3 : i32
    %102 = vector.broadcast %c3_i32 : i32 to vector<8x1xi32>
    %103 = arith.addi %12, %102 : vector<8x1xi32>
    %c8_i32_29 = arith.constant 8 : i32
    %104 = vector.broadcast %c8_i32_29 : i32 to vector<8x1xi32>
    %105 = arith.cmpi slt, %103, %104 : vector<8x1xi32>
    %cst_30 = arith.constant 0.000000e+00 : f32
    %106 = vector.broadcast %cst_30 : f32 to vector<8x1xf32>
    %107 = arith.select %105, %96, %106 : vector<8x1xi1>, vector<8x1xf32>
    %108 = vector.shape_cast %107 : vector<8x1xf32> to vector<1x8x1xf32>
    %cst_31 = arith.constant dense<0.000000e+00> : vector<1xf32>
    %109 = vector.multi_reduction <add>, %108, %cst_31 [1, 2] : vector<1x8x1xf32> to vector<1xf32>
    %110 = vector.shape_cast %109 : vector<1xf32> to vector<1x1x1xf32>
    %111 = vector.extract %110[0, 0, 0] : f32 from vector<1x1x1xf32>
    %112 = arith.addf %85, %111 : f32
    %113 = arith.mulf %101, %101 : vector<8x1xf32>
    %cst_32 = arith.constant 0.000000e+00 : f32
    %114 = vector.broadcast %cst_32 : f32 to vector<8x1xf32>
    %115 = arith.select %105, %113, %114 : vector<8x1xi1>, vector<8x1xf32>
    %116 = vector.shape_cast %115 : vector<8x1xf32> to vector<1x8x1xf32>
    %cst_33 = arith.constant dense<0.000000e+00> : vector<1xf32>
    %117 = vector.multi_reduction <add>, %116, %cst_33 [1, 2] : vector<1x8x1xf32> to vector<1xf32>
    %118 = vector.shape_cast %117 : vector<1xf32> to vector<1x1x1xf32>
    %119 = vector.extract %118[0, 0, 0] : f32 from vector<1x1x1xf32>
    %120 = arith.addf %93, %119 : f32
    %121 = tpu.iota {dimensions = array<i32: 0>} : vector<8x128xi32>
    %c0_i32_34 = arith.constant 0 : i32
    %122 = vector.broadcast %c0_i32_34 : i32 to vector<8x128xi32>
    %123 = arith.cmpi eq, %121, %122 : vector<8x128xi32>
    %cst_35 = arith.constant 0.000000e+00 : f32
    %124 = vector.broadcast %112 : f32 to vector<8x128xf32>
    %125 = vector.broadcast %cst_35 : f32 to vector<8x128xf32>
    %126 = arith.select %123, %124, %125 : vector<8x128xi1>, vector<8x128xf32>
    %c1_i32_36 = arith.constant 1 : i32
    %127 = vector.broadcast %c1_i32_36 : i32 to vector<8x128xi32>
    %128 = arith.cmpi eq, %121, %127 : vector<8x128xi32>
    %cst_37 = arith.constant 0.000000e+00 : f32
    %129 = vector.broadcast %120 : f32 to vector<8x128xf32>
    %130 = vector.broadcast %cst_37 : f32 to vector<8x128xf32>
    %131 = arith.select %128, %129, %130 : vector<8x128xi1>, vector<8x128xf32>
    %132 = arith.addf %126, %131 : vector<8x128xf32>
    %c0_38 = arith.constant 0 : index
    %c0_39 = arith.constant 0 : index
    %133 = vector.load %arg4[%c0_38, %c0_39] : memref<8x128xf32, #tpu.memory_space<vmem>>, vector<8x128xf32>
    tpu.vector_store %arg4[%c0_38, %c0_39], %132 {strides = array<i32>} : memref<8x128xf32, #tpu.memory_space<vmem>>, vector<8x128xf32>,
    return
  }
  func.func @transform_0(%arg0: i32) -> i32 {
    %c0_i32 = arith.constant 0 : i32
    %c0_i32_0 = arith.constant 0 : i32
    return %c0_i32 : i32
  }
  func.func @transform_1(%arg0: i32) -> (i32, i32) {
    %c0_i32 = arith.constant 0 : i32
    %c0_i32_0 = arith.constant 0 : i32
    return %arg0, %c0_i32 : i32, i32
  }
  func.func @transform_2(%arg0: i32) -> (i32, i32) {
    %c0_i32 = arith.constant 0 : i32
    %c0_i32_0 = arith.constant 0 : i32
    return %arg0, %c0_i32 : i32, i32
  }
  func.func @transform_3(%arg0: i32) -> (i32, i32) {
    %c0_i32 = arith.constant 0 : i32
    %c0_i32_0 = arith.constant 0 : i32
    return %arg0, %c0_i32 : i32, i32
  }
}

</mosaic_0001>

<bundles_post_ra>
// kernel: tpu_custom_call.1
= control target key start
LH: loop header
LB: loop body
LE: loop exit
PB: predicated region body
PF: predicated region fallthrough
CT: control target
= control target key end

     0   :  { %9 = vsyncpa [#allocation4], 0  ;;  %s432_s0 = inlined_call_operand.<no memory space> [shape: f32[1], index: 0, kind: input, shape index: {}]   ;;  %s433_s1 = inlined_call_operand.hbm [shape: f32[8,128], index: 1, kind: input, shape index: {}]   ;;  %s434_s2 = inlined_call_operand.hbm [shape: f32[8,128], index: 2, kind: input, shape index: {}]   ;;  %s435_s3 = inlined_call_operand.hbm [shape: f32[8,128], index: 3, kind: output, shape index: {}]  }
   0x1   :  { %10 = vsyncpa [#allocation7], 0 }
   0x2   :  { %11 = vsyncpa [#allocation5], 0  ;;  %s346_s12 = smov [#allocation3]   ;;  %s347_s14 = smov [#allocation6]  }
   0x3   :  { %s20_s13 = sshll.u32 %s346_s12, 4  ;;  %s30_s15 = sshll.u32 %s347_s14, 4  ;;  %s21_s13 = int_to_ptr.vmem [resolvable:$true] %s20_s13  ;;  %s31_s15 = int_to_ptr.vmem [resolvable:$true] %s30_s15 }
   0x4   :  { %s274_s18 = scalar_lea.hbm %s433_s1, 128 }
   0x5   :  { %p275_p0 = scmp.ne.s32.totalorder %s433_s1, %s274_s18  ;;  %p278_p1 = scmp.lt.u32.totalorder %s274_s18, %s433_s1 }
   0x7   :  { %p280_p2 = pnand %p278_p1, %p275_p0 }
   0x9   :  { %283 = shalt.err (!%p280_p2)
}
   0xa   :  { %s284_s23 = scalar_lea.vmem %s21_s13, 128  ;;  %p289_p4 = scmp.lt.s32.totalorder %s21_s13, %s21_s13 }
   0xb   :  { %p285_p3 = scmp.ne.s32.totalorder %s21_s13, %s284_s23  ;;  %p290_p5 = scmp.lt.s32.totalorder %s284_s23, %s284_s23 }
   0xd   :  { %p291_p6 = por %p290_p5, %p289_p4 }
   0xf   :  { %p292_p7 = pnand %p291_p6, %p285_p3 }
  0x11   :  { %295 = shalt.err (!%p292_p7)
}
  0x12   :  { %23 = dma.hbm_to_vmem [thread:$0]  %s433_s1, 128, %s21_s13, [#allocation4]  }
  0x13   :  { %s296_s28 = scalar_lea.hbm %s434_s2, 128 }
  0x14   :  { %p297_p8 = scmp.ne.s32.totalorder %s434_s2, %s296_s28  ;;  %p300_p9 = scmp.lt.u32.totalorder %s296_s28, %s434_s2 }
  0x16   :  { %p302_p10 = pnand %p300_p9, %p297_p8 }
  0x18   :  { %305 = shalt.err (!%p302_p10)
}
  0x19   :  { %s306_s6 = scalar_lea.vmem %s31_s15, 128  ;;  %p311_p12 = scmp.lt.s32.totalorder %s31_s15, %s31_s15 }
  0x1a   :  { %p307_p11 = scmp.ne.s32.totalorder %s31_s15, %s306_s6  ;;  %p312_p13 = scmp.lt.s32.totalorder %s306_s6, %s306_s6 }
  0x1c   :  { %p313_p0 = por %p312_p13, %p311_p12 }
  0x1e   :  { %p314_p1 = pnand %p313_p0, %p307_p11 }
  0x20   :  { %317 = shalt.err (!%p314_p1)
}
  0x21   :  { %33 = dma.hbm_to_vmem [thread:$0]  %s434_s2, 128, %s31_s15, [#allocation7]  }
  0x22   :  { %340 = dma.done.wait [#allocation4], 128  }
  0x23   :  { %341 = vsyncadd [#allocation4], 4294967168 }
  0x24   :  { %342 = dma.done.wait [#allocation7], 128  }
  0x25   :  { %343 = vsyncadd [#allocation7], 4294967168  ;;  %v41_v0 = vld [vmem:[#allocation3] sm:$0xff]  ;;  %v42_v1 = vld [vmem:[#allocation6] sm:$0xff]  ;;  %s348_s8 = smov 32   ;;  %s349_s9 = smov 96   ;;  %v46_v12 = vlaneseq  ;;  %v63_v21 = vstv %s432_s0 }
  0x26   :  { %v43_v2 = vsub.f32 %v41_v0, %v42_v1  ;;  %s350_s10 = smov 64   ;;  %vm52_vm0 = vcmask 261120   ;;  %vm68_vm2 = vcmask 7168   ;;  %s351_s25 = smov [#allocation8]  }
  0x27   :  { %v396_v13 = vshrl.u32 %v46_v12, 7  ;;  %s234_s26 = sshll.u32 %s351_s25, 4  ;;  %s235_s26 = int_to_ptr.vmem [resolvable:$true] %s234_s26 }
  0x28   :  { %v44_v3 = vadd.f32 1e-06, %v43_v2  ;;  %s318_s27 = scalar_lea.vmem %s235_s26, 128  ;;  %p323_p3 = scmp.lt.s32.totalorder %s235_s26, %s235_s26 }
  0x29   :  { %v51_v14 = vmul.u32 4, %v396_v13  ;;  %vm220_vm14 = vcmp.eq.s32.totalorder %v396_v13, 0  ;;  %vm223_vm15 = vcmp.eq.s32.totalorder %v396_v13, 1  ;;  %p319_p2 = scmp.ne.s32.totalorder %s235_s26, %s318_s27  ;;  %p324_p4 = scmp.lt.s32.totalorder %s318_s27, %s318_s27 }
  0x2a   :  { %v45_v4 = vmul.f32 %v44_v3, %v44_v3 }
  0x2b   :  { %vm66_vm1 = vcmp.lt.s32.totalorder %v51_v14, 8  ;;  %v109_v29 = vadd.s32 1, %v51_v14  ;;  %v151_v30 = vadd.s32 2, %v51_v14  ;;  %v193_v31 = vadd.s32 3, %v51_v14  ;;  %p325_p5 = por %p324_p4, %p323_p3 }
  0x2c   :  { %178 = vrot.lane.b32.xlu1 %v45_v4, %s348_s8  ;;  %94 = vrot.lane.b32.xlu0 %v45_v4, %s349_s9  ;;  %v53_v5 = vsel %vm52_vm0, %v45_v4, 0.0 }
  0x2d   :  { %vm110_vm5 = vcmp.lt.s32.totalorder %v109_v29, 8  ;;  %vm152_vm6 = vcmp.lt.s32.totalorder %v151_v30, 8  ;;  %vm194_vm7 = vcmp.lt.s32.totalorder %v193_v31, 8  ;;  %p326_p6 = pnand %p325_p5, %p319_p2 }
  0x30   :  { %136 = vrot.lane.b32.xlu0 %v45_v4, %s350_s10 }
  0x50   :  { %54 = vadd.xlane.f32.xlu1 %v53_v5 }
  0x9e   :  { %v179_v6 = vpop.permute.xlu1 %178  ;;  %v95_v7 = vpop.permute.xlu0 %94 }
  0x9f   :  { %v97_v8 = vsel %vm52_vm0, %v95_v7, 0.0  ;;  %v181_v9 = vsel %vm52_vm0, %v179_v6, 0.0 }
  0xa0   :  { %98 = vadd.xlane.f32.xlu0 %v97_v8  ;;  %182 = vadd.xlane.f32.xlu1 %v181_v9 }
  0xa2   :  { %v137_v10 = vpop.permute.xlu0 %136 }
  0xa3   :  { %v139_v11 = vsel %vm52_vm0, %v137_v10, 0.0 }
  0xa4   :  { %140 = vadd.xlane.f32.xlu0 %v139_v11 }
  0xdd   :  { %v55_v15 = vpop.xlane.xlu1 %54 }
  0xde   :  { %266 = vrsqrt.f32 %v55_v15  ;;  %v67_v16 = vsel %vm66_vm1, %v55_v15, 0.0  ;;  %vm58_vm3 = vcmp.eq.f32.partialorder %v55_v15, inf  ;;  %v61_v19 = vand.u32 2147483648, %v55_v15 }
  0xdf   :  { %v69_v17 = vsel %vm68_vm2, %v67_v16, 0.0  ;;  %vm60_vm4 = vcmp.eq.f32.partialorder %v55_v15, 0.0 }
  0xe0   :  { %70 = vadd.xlane.f32.xlu0 %v69_v17 }
  0xe8   :  { %v267_v18 = vpop.eup %266 }
  0xe9   :  { %v57_v20 = vmul.f32 %v267_v18, %v55_v15 }
  0xeb   :  { %v59_v22 = vsel %vm58_vm3, %v55_v15, %v57_v20 }
  0xec   :  { %v62_v23 = vsel %vm60_vm4, %v61_v19, %v59_v22 }
  0xed   :  { %v64_v24 = vsub.f32 %v63_v21, %v62_v23 }
  0xef   :  { %v65_v25 = vmax.f32 %v64_v24, 0.0 }
  0xf1   :  { %v80_v26 = vmul.f32 %v65_v25, %v65_v25 }
  0xf3   :  { %v81_v27 = vsel %vm66_vm1, %v80_v26, 0.0 }
  0xf4   :  { %v82_v28 = vsel %vm68_vm2, %v81_v27, 0.0 }
  0xf5   :  { %83 = vadd.xlane.f32.xlu1 %v82_v28 }
 0x12d   :  { %v99_v32 = vpop.xlane.xlu0 %98  ;;  %v183_v33 = vpop.xlane.xlu1 %182 }
 0x12e   :  { %268 = vrsqrt.f32 %v99_v32  ;;  %v111_v34 = vsel %vm110_vm5, %v99_v32, 0.0  ;;  %v195_v38 = vsel %vm194_vm7, %v183_v33, 0.0  ;;  %vm102_vm8 = vcmp.eq.f32.partialorder %v99_v32, inf }
 0x12f   :  { %270 = vrsqrt.f32 %v183_v33  ;;  %v112_v35 = vsel %vm68_vm2, %v111_v34, 0.0  ;;  %v196_v40 = vsel %vm68_vm2, %v195_v38, 0.0  ;;  %v105_v44 = vand.u32 2147483648, %v99_v32 }
 0x130   :  { %113 = vadd.xlane.f32.xlu0 %v112_v35  ;;  %vm104_vm9 = vcmp.eq.f32.partialorder %v99_v32, 0.0  ;;  %vm186_vm10 = vcmp.eq.f32.partialorder %v183_v33, inf  ;;  %v189_v47 = vand.u32 2147483648, %v183_v33  ;;  %vm188_vm11 = vcmp.eq.f32.partialorder %v183_v33, 0.0 }
 0x131   :  { %v141_v36 = vpop.xlane.xlu0 %140 }
 0x132   :  { %272 = vrsqrt.f32 %v141_v36  ;;  %v153_v37 = vsel %vm152_vm6, %v141_v36, 0.0  ;;  %vm144_vm12 = vcmp.eq.f32.partialorder %v141_v36, inf  ;;  %v147_v54 = vand.u32 2147483648, %v141_v36 }
 0x133   :  { %v154_v39 = vsel %vm68_vm2, %v153_v37, 0.0  ;;  %vm146_vm13 = vcmp.eq.f32.partialorder %v141_v36, 0.0 }
 0x134   :  { %155 = vadd.xlane.f32.xlu0 %v154_v39 }
 0x138   :  { %v269_v41 = vpop.eup %268  ;;  %197 = vadd.xlane.f32.xlu0 %v196_v40 }
 0x139   :  { %v271_v42 = vpop.eup %270  ;;  %v101_v43 = vmul.f32 %v269_v41, %v99_v32 }
 0x13a   :  { %v185_v45 = vmul.f32 %v271_v42, %v183_v33 }
 0x13b   :  { %v103_v46 = vsel %vm102_vm8, %v99_v32, %v101_v43 }
 0x13c   :  { %v273_v48 = vpop.eup %272  ;;  %v106_v49 = vsel %vm104_vm9, %v105_v44, %v103_v46  ;;  %v187_v50 = vsel %vm186_vm10, %v183_v33, %v185_v45 }
 0x13d   :  { %v107_v51 = vsub.f32 %v63_v21, %v106_v49  ;;  %v143_v52 = vmul.f32 %v273_v48, %v141_v36  ;;  %v190_v53 = vsel %vm188_vm11, %v189_v47, %v187_v50 }
 0x13e   :  { %v191_v55 = vsub.f32 %v63_v21, %v190_v53 }
 0x13f   :  { %v108_v56 = vmax.f32 %v107_v51, 0.0  ;;  %v145_v57 = vsel %vm144_vm12, %v141_v36, %v143_v52 }
 0x140   :  { %v148_v58 = vsel %vm146_vm13, %v147_v54, %v145_v57  ;;  %v192_v61 = vmax.f32 %v191_v55, 0.0 }
 0x141   :  { %v123_v59 = vmul.f32 %v108_v56, %v108_v56  ;;  %v149_v60 = vsub.f32 %v63_v21, %v148_v58 }
 0x142   :  { %v207_v2 = vmul.f32 %v192_v61, %v192_v61 }
 0x143   :  { %v124_v62 = vsel %vm110_vm5, %v123_v59, 0.0  ;;  %v150_v63 = vmax.f32 %v149_v60, 0.0 }
 0x144   :  { %v125_v0 = vsel %vm68_vm2, %v124_v62, 0.0  ;;  %v208_v5 = vsel %vm194_vm7, %v207_v2, 0.0 }
 0x145   :  { %126 = vadd.xlane.f32.xlu1 %v125_v0  ;;  %v165_v1 = vmul.f32 %v150_v63, %v150_v63  ;;  %v209_v6 = vsel %vm68_vm2, %v208_v5, 0.0 }
 0x147   :  { %v166_v3 = vsel %vm152_vm6, %v165_v1, 0.0 }
 0x148   :  { %v167_v4 = vsel %vm68_vm2, %v166_v3, 0.0 }
 0x149   :  { %168 = vadd.xlane.f32.xlu1 %v167_v4 }
 0x14d   :  { %210 = vadd.xlane.f32.xlu1 %v209_v6 }
 0x16d   :  { %v71_v7 = vpop.xlane.xlu0 %70 }
 0x16e   :  { %v72_v8 = vrot.slane %v71_v7, 4 }
 0x170   :  { %v73_v9 = vadd.f32 %v72_v8, %v71_v7 }
 0x172   :  { %v74_v10 = vrot.slane %v73_v9, 2 }
 0x174   :  { %v75_v11 = vadd.f32 %v74_v10, %v73_v9 }
 0x176   :  { %v76_v12 = vrot.slane %v75_v11, 1 }
 0x178   :  { %v77_v14 = vadd.f32 %v76_v12, %v75_v11 }
 0x17a   :  { %244 = vpush %v77_v14 }
 0x182   :  { %v84_v15 = vpop.xlane.xlu1 %83 }
 0x183   :  { %v85_v16 = vrot.slane %v84_v15, 4 }
 0x185   :  { %v86_v17 = vadd.f32 %v85_v16, %v84_v15 }
 0x187   :  { %v87_v18 = vrot.slane %v86_v17, 2 }
 0x189   :  { %v88_v19 = vadd.f32 %v87_v18, %v86_v17 }
 0x18b   :  { %v89_v20 = vrot.slane %v88_v19, 1 }
 0x18d   :  { %v90_v21 = vadd.f32 %v89_v20, %v88_v19 }
 0x18f   :  { %246 = vpush %v90_v21 }
 0x1ab   :  { %s245_s0 = spop %244 }
 0x1bd   :  { %v114_v22 = vpop.xlane.xlu0 %113 }
 0x1be   :  { %v115_v23 = vrot.slane %v114_v22, 4 }
 0x1c0   :  { %v116_v24 = vadd.f32 %v115_v23, %v114_v22  ;;  %s247_s12 = spop %246 }
 0x1c1   :  { %v156_v27 = vpop.xlane.xlu0 %155 }
 0x1c2   :  { %v117_v25 = vrot.slane %v116_v24, 2  ;;  %v157_v30 = vrot.slane %v156_v27, 4 }
 0x1c4   :  { %v118_v26 = vadd.f32 %v117_v25, %v116_v24  ;;  %v158_v32 = vadd.f32 %v157_v30, %v156_v27 }
 0x1c5   :  { %v198_v31 = vpop.xlane.xlu0 %197 }
 0x1c6   :  { %v119_v28 = vrot.slane %v118_v26, 1  ;;  %v199_v33 = vrot.slane %v198_v31, 4  ;;  %v159_v34 = vrot.slane %v158_v32, 2 }
 0x1c8   :  { %v120_v29 = vadd.f32 %v119_v28, %v118_v26  ;;  %v200_v35 = vadd.f32 %v199_v33, %v198_v31  ;;  %v160_v41 = vadd.f32 %v159_v34, %v158_v32 }
 0x1ca   :  { %248 = vpush %v120_v29  ;;  %v201_v39 = vrot.slane %v200_v35, 2  ;;  %v161_v48 = vrot.slane %v160_v41, 1 }
 0x1cc   :  { %v202_v46 = vadd.f32 %v201_v39, %v200_v35  ;;  %v162_v55 = vadd.f32 %v161_v48, %v160_v41 }
 0x1ce   :  { %v203_v56 = vrot.slane %v202_v46, 1 }
 0x1d0   :  { %v204_v61 = vadd.f32 %v203_v56, %v202_v46 }
 0x1d2   :  { %v127_v36 = vpop.xlane.xlu1 %126 }
 0x1d3   :  { %v128_v37 = vrot.slane %v127_v36, 4 }
 0x1d5   :  { %v129_v38 = vadd.f32 %v128_v37, %v127_v36 }
 0x1d6   :  { %v169_v40 = vpop.xlane.xlu1 %168 }
 0x1d7   :  { %v130_v42 = vrot.slane %v129_v38, 2  ;;  %v170_v43 = vrot.slane %v169_v40, 4 }
 0x1d9   :  { %v171_v44 = vadd.f32 %v170_v43, %v169_v40  ;;  %v131_v45 = vadd.f32 %v130_v42, %v129_v38 }
 0x1da   :  { %v211_v47 = vpop.xlane.xlu1 %210 }
 0x1db   :  { %v172_v49 = vrot.slane %v171_v44, 2  ;;  %v212_v50 = vrot.slane %v211_v47, 4  ;;  %v132_v51 = vrot.slane %v131_v45, 1 }
 0x1dd   :  { %v213_v52 = vadd.f32 %v212_v50, %v211_v47  ;;  %v133_v53 = vadd.f32 %v132_v51, %v131_v45  ;;  %v173_v54 = vadd.f32 %v172_v49, %v171_v44 }
 0x1df   :  { %v214_v57 = vrot.slane %v213_v52, 2  ;;  %250 = vpush %v133_v53  ;;  %v174_v58 = vrot.slane %v173_v54, 1 }
 0x1e0   :  { %252 = vpush %v162_v55 }
 0x1e1   :  { %v215_v59 = vadd.f32 %v214_v57, %v213_v52  ;;  %v175_v60 = vadd.f32 %v174_v58, %v173_v54 }
 0x1e3   :  { %254 = vpush %v175_v60  ;;  %v216_v62 = vrot.slane %v215_v59, 1 }
 0x1e4   :  { %256 = vpush %v204_v61 }
 0x1e5   :  { %v217_v63 = vadd.f32 %v216_v62, %v215_v59 }
 0x1e7   :  { %258 = vpush %v217_v63 }
 0x1fb   :  { %s249_s13 = spop %248 }
 0x1fc   :  { %s122_s16 = sadd.f32 %s249_s13, %s245_s0 }
 0x210   :  { %s251_s14 = spop %250 }
 0x211   :  { %s253_s15 = spop %252  ;;  %s135_s19 = sadd.f32 %s251_s14, %s247_s12 }
 0x212   :  { %s164_s17 = sadd.f32 %s253_s15, %s122_s16 }
 0x214   :  { %s255_s18 = spop %254 }
 0x215   :  { %s257_s20 = spop %256  ;;  %s177_s22 = sadd.f32 %s255_s18, %s135_s19 }
 0x216   :  { %s206_s21 = sadd.f32 %s257_s20, %s164_s17 }
 0x218   :  { %s259_s23 = spop %258  ;;  %v221_v0 = vstv %s206_s21 }
 0x219   :  { %s219_s24 = sadd.f32 %s259_s23, %s177_s22  ;;  %v222_v2 = vsel %vm220_vm14, %v221_v0, 0.0 }
 0x21b   :  { %v224_v1 = vstv %s219_s24 }
 0x21c   :  { %v225_v3 = vsel %vm223_vm15, %v224_v1, 0.0 }
 0x21d   :  { %v226_v4 = vadd.f32 %v225_v3, %v222_v2 }
 0x21f   :  { %227 = vst [vmem:[#allocation8] sm:$0xff] %v226_v4 }
 0x220   :  { %329 = shalt.err (!%p326_p6)
}
 0x221   :  { %s330_s30 = scalar_lea.hbm %s435_s3, 128 }
 0x222   :  { %p331_p7 = scmp.ne.s32.totalorder %s435_s3, %s330_s30  ;;  %p334_p8 = scmp.lt.u32.totalorder %s330_s30, %s435_s3 }
 0x224   :  { %p336_p9 = pnand %p334_p8, %p331_p7 }
 0x226   :  { %339 = shalt.err (!%p336_p9)
}
 0x227   :  { %237 = dma.vmem_to_hbm [thread:$0]  %s235_s26, 128, %s435_s3, [#allocation5]  }
 0x228   :  { %344 = dma.done.wait [#allocation5], 128  }
 0x229   :  { %345 = vsyncadd [#allocation5], 4294967168 }
 0x22a   :  { %241 = vsyncpa [#allocation4], 1 }
 0x22b   :  { %242 = vsyncpa [#allocation7], 1 }
 0x22c   :  { %243 = vsyncpa [#allocation5], 1 }

</bundles_post_ra>
